<compile_context>
chip_gen: v7x
topology: tpu7x:2x2x1
jax: 0.10.0
libtpu: 0.0.40
codegen_flags: <defaults>
</compile_context>

<pallas_src>
import functools

import jax
import jax.numpy as jnp
from jax.experimental import pallas as pl
from jax.experimental.pallas import tpu as pltpu


def _agg_kernel(x_ref, w_ref, b_ref, out_ref, m_ref, l_ref, acc_ref, *, n_total, tn):
    """One grid step: process a (tn, C) block of instances with online softmax."""
    k = pl.program_id(0)

    @pl.when(k == 0)
    def _init():
        m_ref[...] = jnp.full((1, 1), -jnp.inf, jnp.float32)    # running max
        l_ref[...] = jnp.zeros_like(l_ref)                      # running sum
        acc_ref[...] = jnp.zeros_like(acc_ref)                  # rescaled weighted sum

    x = x_ref[...]                                              # (tn, C), native dtype

    # Collapsed two-branch head: one tiny (tn, C) x (C, 2) MXU matmul, f32 accumulation.
    z = jnp.dot(x, w_ref[...], preferred_element_type=jnp.float32) + b_ref[...]
    g = jnp.tanh(z[:, 0:1]) * jax.nn.sigmoid(z[:, 1:2])         # gate logits (tn, 1), f32

    if (n_total % tn) != 0:                                     # static: only if ragged tail
        row = k * tn + jax.lax.broadcasted_iota(jnp.int32, (tn, 1), 0)
        valid = row < n_total
        g = jnp.where(valid, g, -jnp.inf)                       # padded rows -> zero weight
        # Zero the Pallas-padded tail rows so NaN/Inf garbage cannot poison the MXU
        # reduction (0 * NaN = NaN).  Lowered only in the ragged case.
        x = jnp.where(valid, x, jnp.zeros_like(x))

    # Online softmax over the instance axis, state carried in VMEM scratch.
    m_prev = m_ref[...]                                         # (1, 1)
    m_new = jnp.maximum(m_prev, jnp.max(g, axis=0, keepdims=True))
    alpha = jnp.exp(m_prev - m_new)                             # rescale factor for old stats
    p = jnp.exp(g - m_new)                                      # (tn, 1) unnormalized weights
    l_ref[...] = alpha * l_ref[...] + jnp.sum(p, axis=0, keepdims=True)

    # Weighted reduction on the MXU: contract the instance axis of p (tn,1) with x (tn,C).
    xr = x if x.dtype == jnp.float32 else x.astype(jnp.float32)
    wsum = jax.lax.dot_general(
        p, xr,
        dimension_numbers=(((0,), (0,)), ((), ())),             # p^T @ x -> (1, C)
        preferred_element_type=jnp.float32)
    acc_ref[...] = alpha * acc_ref[...] + wsum
    m_ref[...] = m_new

    @pl.when(k == pl.num_programs(0) - 1)
    def _finalize():
        # Exactly one reciprocal per call -> exact form is effectively free.
        inv_l = pl.reciprocal(l_ref[...], approx=False)
        out_ref[...] = (acc_ref[...] * inv_l).astype(out_ref.dtype)


def _choose_block_n(c, itemsize, *, target_bytes=2 << 20, vmem_budget=12 << 20):
    """Pick an instance-block size so each x block is ~2 MiB of DMA, capped so the
    double-buffered x stays under `vmem_budget` (safe on v5e scoped 16 MiB, v7x 64 MiB)."""
    row_bytes = max(1, c * itemsize)
    tn = max(128, target_bytes // row_bytes)
    cap = max(8, vmem_budget // (2 * row_bytes))
    tn = min(tn, cap)
    tn = max(8, (int(tn) // 8) * 8)                             # multiple of 8
    return int(tn)


def aggregation_forward(x, params, *, block_n=None):
    """x: (N, C). params: per-branch weights stored (in, out) and biases (1, out)."""
    n, c = x.shape
    ncls = params["wa2"].shape[1]
    assert ncls == 1, "Aggregation kernel implements the n_classes == 1 head"

    # ---- collapse each branch's two stacked Linears (exact: no activation between) ----
    wa = params["wa1"] @ params["wa2"]                              # (C, 1)
    wb = params["wb1"] @ params["wb2"]                              # (C, 1)
    ba = params["ba1"] @ params["wa2"] + params["ba2"]              # (1, 1)
    bb = params["bb1"] @ params["wb2"] + params["bb2"]              # (1, 1)
    w_eff = jnp.concatenate([wa, wb], axis=1).astype(x.dtype)       # (C, 2), x's dtype (bf16 ok)
    b_eff = jnp.concatenate([ba, bb], axis=1).astype(jnp.float32)   # (1, 2), f32

    # ---- choose the instance-block size (scaled with C, VMEM-budgeted) ----
    itemsize = jnp.dtype(x.dtype).itemsize
    if block_n is None:
        block_n = _choose_block_n(c, itemsize)
    tn = int(block_n)
    if tn >= n:
        tn = n                                                      # single full block, exact dims
    else:
        assert tn % 8 == 0, "block_n must be a multiple of 8 (or >= N)"
    n_blocks = pl.cdiv(n, tn)

    # ---- explicit VMEM budget: double-buffered x + weights + out + scratch ----
    footprint = (2 * tn * c * itemsize                              # x (double-buffered)
                 + 2 * (c * 2 + 2) * 4                              # w_eff + b_eff (double-buffered)
                 + 2 * c * itemsize                                 # out (double-buffered)
                 + (c + 2) * 4)                                     # scratch (m, l, acc)
    vmem_limit = int(min(max(2 * footprint, 16 << 20), 48 << 20))

    kernel = functools.partial(_agg_kernel, n_total=n, tn=tn)

    return pl.pallas_call(
        kernel,
        out_shape=jax.ShapeDtypeStruct((1, c), x.dtype),
        grid_spec=pltpu.PrefetchScalarGridSpec(
            num_scalar_prefetch=0,
            grid=(n_blocks,),
            in_specs=[
                pl.BlockSpec((tn, c), lambda k: (k, 0)),            # x streamed over N
                pl.BlockSpec((c, 2), lambda k: (0, 0)),             # collapsed W_eff (resident)
                pl.BlockSpec((1, 2), lambda k: (0, 0)),             # collapsed bias
            ],
            out_specs=pl.BlockSpec((1, c), lambda k: (0, 0)),       # same block every step
            scratch_shapes=[
                pltpu.VMEM((1, 1), jnp.float32),                    # running max
                pltpu.VMEM((1, 1), jnp.float32),                    # running sum
                pltpu.VMEM((1, c), jnp.float32),                    # f32 accumulator
            ],
        ),
        compiler_params=pltpu.CompilerParams(
            # The N axis carries the online-softmax state -> sequential ("arbitrary").
            dimension_semantics=("arbitrary",),
            vmem_limit_bytes=vmem_limit,
        ),
    )(x, w_eff, b_eff)


def init_params(key, inchannel, hidchannel, n_classes=1):
    """Deterministic init mimicking nn.Linear default (uniform +/- 1/sqrt(fan_in))."""
    ks = jax.random.split(key, 8)

    def lin(kw, kb, fan_in, fan_out):
        bound = 1.0 / jnp.sqrt(fan_in)
        w = jax.random.uniform(kw, (fan_in, fan_out), jnp.float32, -bound, bound)
        b = jax.random.uniform(kb, (1, fan_out), jnp.float32, -bound, bound)
        return w, b

    wa1, ba1 = lin(ks[0], ks[1], inchannel, hidchannel)
    wa2, ba2 = lin(ks[2], ks[3], hidchannel, n_classes)
    wb1, bb1 = lin(ks[4], ks[5], inchannel, hidchannel)
    wb2, bb2 = lin(ks[6], ks[7], hidchannel, n_classes)
    return dict(wa1=wa1, ba1=ba1, wa2=wa2, ba2=ba2,
                wb1=wb1, bb1=bb1, wb2=wb2, bb2=bb2)


def aggregation_reference(x, p):
    """Pure-JAX reference matching the PyTorch forward exactly (two stacked Linears)."""
    a = jnp.tanh((x @ p["wa1"] + p["ba1"]) @ p["wa2"] + p["ba2"])        # (N, 1)
    b = jax.nn.sigmoid((x @ p["wb1"] + p["bb1"]) @ p["wb2"] + p["bb2"])  # (N, 1)
    w = jax.nn.softmax((a * b).T, axis=1)                                # (1, N)
    return w @ x                                                         # (1, C)


if __name__ == "__main__":
    key = jax.random.PRNGKey(0)
    k_x, k_p, k_x2 = jax.random.split(key, 3)

    # --- test 1: the module's tiny shapes, single block --------------------------
    N, INCH, HID, NCLS = 16, 32, 16, 1
    x = jax.random.normal(k_x, (N, INCH), jnp.float32)
    params = init_params(k_p, INCH, HID, NCLS)

    out = jax.block_until_ready(aggregation_forward(x, params))
    ref = aggregation_reference(x, params)
    assert out.shape == (NCLS, INCH)
    assert jnp.allclose(out, ref, atol=1e-5, rtol=1e-5), "mismatch vs reference (test 1)"

    # --- test 2: multi-block online softmax + ragged tail (N=200, block=64) ------
    N2 = 200
    x2 = jax.random.normal(k_x2, (N2, INCH), jnp.float32)
    out2 = jax.block_until_ready(aggregation_forward(x2, params, block_n=64))
    ref2 = aggregation_reference(x2, params)
    assert out2.shape == (NCLS, INCH)
    assert jnp.allclose(out2, ref2, atol=1e-4, rtol=1e-4), "mismatch vs reference (test 2)"

    print("KERNEL_OK")
</pallas_src>

<mosaic_0001>
module attributes {stable_mosaic.version = 11 : i64} {
  func.func @_agg_kernel(%arg0: i32, %arg1: memref<16x32xf32, #tpu.memory_space<vmem>>, %arg2: memref<32x2xf32, #tpu.memory_space<vmem>>, %arg3: memref<1x2xf32, #tpu.memory_space<vmem>>, %arg4: memref<1x32xf32, #tpu.memory_space<vmem>>, %arg5: memref<1x1xf32, #tpu.memory_space<vmem>>, %arg6: memref<1x1xf32, #tpu.memory_space<vmem>>, %arg7: memref<1x32xf32, #tpu.memory_space<vmem>>) attributes {dimension_semantics = [#tpu.dimension_semantics<arbitrary>], iteration_bounds = array<i64: 1>, scalar_prefetch = 0 : i64, scratch_operands = 3 : i64, tpu.core_type = #tpu.core_type<tc>, window_params = [{transform_indices = @transform_0, window_bounds = array<i64: 16, 32>}, {pipeline_mode = #tpu.pipeline_mode<synchronous>, transform_indices = @transform_1, window_bounds = array<i64: 32, 2>}, {pipeline_mode = #tpu.pipeline_mode<synchronous>, transform_indices = @transform_2, window_bounds = array<i64: 1, 2>}, {pipeline_mode = #tpu.pipeline_mode<synchronous>, transform_indices = @transform_3, window_bounds = array<i64: 1, 32>}]} {
    %c0_i32 = arith.constant 0 : i32
    %0 = arith.cmpi eq, %arg0, %c0_i32 : i32
    %1 = arith.extui %0 : i1 to i32
    %c0_i32_0 = arith.constant 0 : i32
    %2 = arith.cmpi ne, %1, %c0_i32_0 : i32
    scf.if %2 {
      %cst_24 = arith.constant 0xFF800000 : f32
      %43 = vector.broadcast %cst_24 : f32 to vector<1x1xf32>
      %c0_25 = arith.constant 0 : index
      %c0_26 = arith.constant 0 : index
      %44 = vector.load %arg5[%c0_25, %c0_26] : memref<1x1xf32, #tpu.memory_space<vmem>>, vector<1x1xf32>
      tpu.vector_store %arg5[%c0_25, %c0_26], %43 {strides = array<i32>} : memref<1x1xf32, #tpu.memory_space<vmem>>, vector<1x1xf32>,
      %cst_27 = arith.constant 0.000000e+00 : f32
      %45 = vector.broadcast %cst_27 : f32 to vector<1x1xf32>
      %c0_28 = arith.constant 0 : index
      %c0_29 = arith.constant 0 : index
      %46 = vector.load %arg6[%c0_28, %c0_29] : memref<1x1xf32, #tpu.memory_space<vmem>>, vector<1x1xf32>
      tpu.vector_store %arg6[%c0_28, %c0_29], %45 {strides = array<i32>} : memref<1x1xf32, #tpu.memory_space<vmem>>, vector<1x1xf32>,
      %cst_30 = arith.constant 0.000000e+00 : f32
      %47 = vector.broadcast %cst_30 : f32 to vector<1x32xf32>
      %c0_31 = arith.constant 0 : index
      %c0_32 = arith.constant 0 : index
      %48 = vector.load %arg7[%c0_31, %c0_32] : memref<1x32xf32, #tpu.memory_space<vmem>>, vector<1x32xf32>
      tpu.vector_store %arg7[%c0_31, %c0_32], %47 {strides = array<i32>} : memref<1x32xf32, #tpu.memory_space<vmem>>, vector<1x32xf32>,
    } else {
    }
    %c0 = arith.constant 0 : index
    %c0_1 = arith.constant 0 : index
    %3 = vector.load %arg1[%c0, %c0_1] : memref<16x32xf32, #tpu.memory_space<vmem>>, vector<16x32xf32>
    %c0_2 = arith.constant 0 : index
    %c0_3 = arith.constant 0 : index
    %4 = vector.load %arg2[%c0_2, %c0_3] : memref<32x2xf32, #tpu.memory_space<vmem>>, vector<32x2xf32>
    %cst = arith.constant dense<0.000000e+00> : vector<16x2xf32>
    %5 = tpu.matmul %3, %4, %cst {dimension_numbers = #tpu.dot_dimension_numbers<[1], [0], [0], [1], [0, 0, 1, 1], [], []>} : vector<16x32xf32>, vector<32x2xf32>, vector<16x2xf32> -> vector<16x2xf32>
    %c0_4 = arith.constant 0 : index
    %c0_5 = arith.constant 0 : index
    %6 = vector.load %arg3[%c0_4, %c0_5] : memref<1x2xf32, #tpu.memory_space<vmem>>, vector<1x2xf32>
    %7 = vector.broadcast %6 : vector<1x2xf32> to vector<16x2xf32>
    %8 = arith.addf %5, %7 : vector<16x2xf32>
    %9 = vector.extract_strided_slice %8 {offsets = [0, 0], sizes = [16, 1], strides = [1, 1]} : vector<16x2xf32> to vector<16x1xf32>
    %10 = math.tanh %9 : vector<16x1xf32>
    %11 = vector.extract_strided_slice %8 {offsets = [0, 1], sizes = [16, 1], strides = [1, 1]} : vector<16x2xf32> to vector<16x1xf32>
    %12 = arith.negf %11 : vector<16x1xf32>
    %13 = math.exp %12 : vector<16x1xf32>
    %cst_6 = arith.constant 1.000000e+00 : f32
    %14 = vector.broadcast %cst_6 : f32 to vector<16x1xf32>
    %15 = arith.addf %14, %13 : vector<16x1xf32>
    %16 = arith.divf %14, %15 : vector<16x1xf32>
    %17 = arith.mulf %10, %16 : vector<16x1xf32>
    %c0_7 = arith.constant 0 : index
    %c0_8 = arith.constant 0 : index
    %18 = vector.load %arg5[%c0_7, %c0_8] : memref<1x1xf32, #tpu.memory_space<vmem>>, vector<1x1xf32>
    %cst_9 = arith.constant dense<0xFF800000> : vector<1xf32>
    %19 = vector.multi_reduction <maximumf>, %17, %cst_9 [0] : vector<16x1xf32> to vector<1xf32>
    %20 = vector.shape_cast %19 : vector<1xf32> to vector<1x1xf32>
    %21 = arith.maximumf %18, %20 : vector<1x1xf32>
    %22 = arith.subf %18, %21 : vector<1x1xf32>
    %23 = math.exp %22 : vector<1x1xf32>
    %24 = vector.broadcast %21 : vector<1x1xf32> to vector<16x1xf32>
    %25 = arith.subf %17, %24 : vector<16x1xf32>
    %26 = math.exp %25 : vector<16x1xf32>
    %c0_10 = arith.constant 0 : index
    %c0_11 = arith.constant 0 : index
    %27 = vector.load %arg6[%c0_10, %c0_11] : memref<1x1xf32, #tpu.memory_space<vmem>>, vector<1x1xf32>
    %28 = arith.mulf %23, %27 : vector<1x1xf32>
    %cst_12 = arith.constant dense<0.000000e+00> : vector<1xf32>
    %29 = vector.multi_reduction <add>, %26, %cst_12 [0] : vector<16x1xf32> to vector<1xf32>
    %30 = vector.shape_cast %29 : vector<1xf32> to vector<1x1xf32>
    %31 = arith.addf %28, %30 : vector<1x1xf32>
    %c0_13 = arith.constant 0 : index
    %c0_14 = arith.constant 0 : index
    %32 = vector.load %arg6[%c0_13, %c0_14] : memref<1x1xf32, #tpu.memory_space<vmem>>, vector<1x1xf32>
    tpu.vector_store %arg6[%c0_13, %c0_14], %31 {strides = array<i32>} : memref<1x1xf32, #tpu.memory_space<vmem>>, vector<1x1xf32>,
    %cst_15 = arith.constant dense<0.000000e+00> : vector<1x32xf32>
    %33 = tpu.matmul %26, %3, %cst_15 {dimension_numbers = #tpu.dot_dimension_numbers<[0], [0], [1], [1], [0, 1, 1, 1], [], []>} : vector<16x1xf32>, vector<16x32xf32>, vector<1x32xf32> -> vector<1x32xf32>
    %c0_16 = arith.constant 0 : index
    %c0_17 = arith.constant 0 : index
    %34 = vector.load %arg7[%c0_16, %c0_17] : memref<1x32xf32, #tpu.memory_space<vmem>>, vector<1x32xf32>
    %35 = vector.broadcast %23 : vector<1x1xf32> to vector<1x32xf32>
    %36 = arith.mulf %35, %34 : vector<1x32xf32>
    %37 = arith.addf %36, %33 : vector<1x32xf32>
    %c0_18 = arith.constant 0 : index
    %c0_19 = arith.constant 0 : index
    %38 = vector.load %arg7[%c0_18, %c0_19] : memref<1x32xf32, #tpu.memory_space<vmem>>, vector<1x32xf32>
    tpu.vector_store %arg7[%c0_18, %c0_19], %37 {strides = array<i32>} : memref<1x32xf32, #tpu.memory_space<vmem>>, vector<1x32xf32>,
    %c0_20 = arith.constant 0 : index
    %c0_21 = arith.constant 0 : index
    %39 = vector.load %arg5[%c0_20, %c0_21] : memref<1x1xf32, #tpu.memory_space<vmem>>, vector<1x1xf32>
    tpu.vector_store %arg5[%c0_20, %c0_21], %21 {strides = array<i32>} : memref<1x1xf32, #tpu.memory_space<vmem>>, vector<1x1xf32>,
    %c0_i32_22 = arith.constant 0 : i32
    %40 = arith.cmpi eq, %arg0, %c0_i32_22 : i32
    %41 = arith.extui %40 : i1 to i32
    %c0_i32_23 = arith.constant 0 : i32
    %42 = arith.cmpi ne, %41, %c0_i32_23 : i32
    scf.if %42 {
      %c0_24 = arith.constant 0 : index
      %c0_25 = arith.constant 0 : index
      %43 = vector.load %arg6[%c0_24, %c0_25] : memref<1x1xf32, #tpu.memory_space<vmem>>, vector<1x1xf32>
      %44 = tpu.reciprocal %43 : vector<1x1xf32> -> vector<1x1xf32>
      %c0_26 = arith.constant 0 : index
      %c0_27 = arith.constant 0 : index
      %45 = vector.load %arg7[%c0_26, %c0_27] : memref<1x32xf32, #tpu.memory_space<vmem>>, vector<1x32xf32>
      %46 = vector.broadcast %44 : vector<1x1xf32> to vector<1x32xf32>
      %47 = arith.mulf %45, %46 : vector<1x32xf32>
      %c0_28 = arith.constant 0 : index
      %c0_29 = arith.constant 0 : index
      %48 = vector.load %arg4[%c0_28, %c0_29] : memref<1x32xf32, #tpu.memory_space<vmem>>, vector<1x32xf32>
      tpu.vector_store %arg4[%c0_28, %c0_29], %47 {strides = array<i32>} : memref<1x32xf32, #tpu.memory_space<vmem>>, vector<1x32xf32>,
    } else {
    }
    return
  }
  func.func @transform_0(%arg0: i32) -> (i32, i32) {
    %c0_i32 = arith.constant 0 : i32
    %c0_i32_0 = arith.constant 0 : i32
    return %arg0, %c0_i32 : i32, i32
  }
  func.func @transform_1(%arg0: i32) -> (i32, i32) {
    %c0_i32 = arith.constant 0 : i32
    %c0_i32_0 = arith.constant 0 : i32
    %c0_i32_1 = arith.constant 0 : i32
    return %c0_i32, %c0_i32_0 : i32, i32
  }
  func.func @transform_2(%arg0: i32) -> (i32, i32) {
    %c0_i32 = arith.constant 0 : i32
    %c0_i32_0 = arith.constant 0 : i32
    %c0_i32_1 = arith.constant 0 : i32
    return %c0_i32, %c0_i32_0 : i32, i32
  }
  func.func @transform_3(%arg0: i32) -> (i32, i32) {
    %c0_i32 = arith.constant 0 : i32
    %c0_i32_0 = arith.constant 0 : i32
    %c0_i32_1 = arith.constant 0 : i32
    return %c0_i32, %c0_i32_0 : i32, i32
  }
}

</mosaic_0001>

<bundles_post_ra>
// kernel: tpu_custom_call.1
= control target key start
LH: loop header
LB: loop body
LE: loop exit
PB: predicated region body
PF: predicated region fallthrough
CT: control target
= control target key end

     0   :  { %vm37_vm0 = vcmask 261120   ;;  %s514_s0 = inlined_call_operand.vmem [shape: f32[16,32], index: 0, kind: input, shape index: {}]   ;;  %s515_s1 = inlined_call_operand.vmem [shape: f32[32,2], index: 1, kind: input, shape index: {}]   ;;  %s516_s2 = inlined_call_operand.vmem [shape: f32[1,2], index: 2, kind: input, shape index: {}]   ;;  %s517_s3 = inlined_call_operand.hbm [shape: f32[1,32], index: 3, kind: output, shape index: {}]  }
   0x1   :  { %v26_v0 = vld [vmem:[%s515_s1] sm:$0xff]  ;;  %v27_v1 = vld [vmem:[%s515_s1 + $0x8] sm:$0xff]  ;;  %v28_v2 = vld [vmem:[%s515_s1 + $0x10] sm:$0xff] }
   0x2   :  { %v369_v3 = vpack.c.bf16 %v27_v1, %v26_v0  ;;  %v29_v4 = vld [vmem:[%s515_s1 + $0x18] sm:$0xff]  ;;  %v475_v5 = vld [vmem:[%s514_s0] sm:$0xff] }
   0x3   :  { %v373_v6 = vpack.c.bf16 %v29_v4, %v28_v2  ;;  %359 = vmatprep.mubr.msk.f32.mxu0 %vm37_vm0, %v475_v5 }
   0x4   :  { %8 = vsyncpa [#allocation6], 0  ;;  %370 = vmatprep.subr.bf16.mxu0 %v369_v3  ;;  %v481_v7 = vld [vmem:[%s514_s0 + $0x8] sm:$0xff]  ;;  %v336_v8 = vld [vmem:[%s516_s2] ss:$0 sm:$0xff]  ;;  %vm19_vm1 = vcmask 0   ;;  %v159_v35 = vlaneseq }
   0x5   :  { %372 = vmatpush3.bf16.msra.mxu0 %v369_v3  ;;  %v433_v19 = vmov -inf   ;;  %v434_v20 = vmov 0.0   ;;  %s435_s0 = smov 127   ;;  %v436_v23 = vmov 0   ;;  %v437_v24 = vmov 0.0|0.0   ;;  %s439_s2 = smov [#allocation5]  }
   0x6   :  { %374 = vmatprep.subr.bf16.mxu0 %v373_v6  ;;  %20 = vst.msk [vmem:[#allocation2] sm:$0x1] %vm19_vm1, %v433_v19  ;;  %21 = vst.msk [vmem:[#allocation3] sm:$0x1] %vm19_vm1, %v434_v20  ;;  %387 = vset.pattern.permute.xlu0 %v436_v23  ;;  %vm144_vm2 = vcmask 7168   ;;  %v160_v38 = vshrl.u32 %v159_v35, 7  ;;  %v378_v53 = vpack.c.bf16 %v481_v7, %v475_v5 }
   0x7   :  { %377 = vmatprep.subr.bf16.mxu1 %v437_v24  ;;  %vm22_vm3 = vcmask 253952   ;;  %vm438_vm4 = vmmov 0   ;;  %vm216_vm5 = vcmask 130048   ;;  %s328_s25 = sshll.u32 %s439_s2, 4  ;;  %s329_s25 = int_to_ptr.vmem [resolvable:$true] %s328_s25 }
   0x8   :  { %v161_v42 = vsub.s32 0, %v160_v38  ;;  %23 = vst.msk [vmem:[#allocation4] sm:$0x1] %vm22_vm3, %v434_v20  ;;  %379 = vmatpush3.bf16.msra.mxu1 %v378_v53  ;;  %366 = vmatprep.mubr.msk.f32.mxu1 %vm438_vm4, %v434_v20  ;;  %s409_s26 = scalar_lea.vmem %s329_s25, 16  ;;  %s413_s27 = scalar_lea.vmem %s329_s25, 32 }
   0x9   :  { %376 = vmatpush3.bf16.msra.mxu0 %v373_v6  ;;  %p410_p0 = scmp.ne.s32.totalorder %s329_s25, %s409_s26  ;;  %p414_p1 = scmp.lt.s32.totalorder %s329_s25, %s329_s25 }
   0xa   :  { %p415_p2 = scmp.lt.s32.totalorder %s413_s27, %s409_s26 }
   0xc   :  { %360 = vmatmul.mubr.msk.f32.vlgmr.msra.gmra.mrb[0].mxu0 %vm37_vm0, %v481_v7  ;;  %p416_p3 = por %p415_p2, %p414_p1 }
   0xd   :  { %v143_v41 = vld [vmem:[#allocation2] sm:$0x1]  ;;  %v170_v63 = vld [vmem:[#allocation3] sm:$0x1] }
   0xe   :  { %p417_p4 = pnand %p416_p3, %p410_p0 }
  0xdf   :  { %v361_v9 = vpop.f32.mrb[0].mxu0 }
  0xe0   :  { %v116_v10 = vadd.f32 %v361_v9, %v336_v8  ;;  %v110_v11 = vpop.f32.mrb[1].mxu0  ;;  %v290_v9 = vld [vmem:[#allocation4] sm:$0x1] }
  0xe1   :  { %v111_v12 = vadd.f32 %v336_v8, %v110_v11 }
  0xe2   :  { %v340_v13 = vmul.f32 -1.442695, %v116_v10 }
  0xe3   :  { %v339_v14 = vmul.f32 -1.442695, %v111_v12 }
  0xe4   :  { %389 = vpow2.f32 %v340_v13 }
  0xe5   :  { %391 = vpow2.f32 %v339_v14 }
  0xee   :  { %v390_v15 = vpop.eup %389 }
  0xef   :  { %v392_v16 = vpop.eup %391  ;;  %v128_v18 = vadd.f32 1.0, %v390_v15 }
  0xf0   :  { %v127_v17 = vadd.f32 1.0, %v392_v16 }
  0xf2   :  { %393 = vrcp.f32 %v127_v17 }
  0xf3   :  { %395 = vrcp.f32 %v128_v18 }
  0xf4   :  { %397 = vtanh.f32 %v111_v12 }
  0xf5   :  { %399 = vtanh.f32 %v116_v10 }
  0xfc   :  { %v394_v21 = vpop.eup %393 }
  0xfd   :  { %135 = vrot.lane.b32.xlu0 %v394_v21, %s435_s0  ;;  %v396_v22 = vpop.eup %395 }
  0xfe   :  { %v398_v26 = vpop.eup %397 }
  0xff   :  { %v400_v28 = vpop.eup %399 }
 0x101   :  { %137 = vrot.lane.b32.xlu0 %v396_v22, %s435_s0 }
 0x16f   :  { %v136_v25 = vpop.permute.xlu0 %135 }
 0x170   :  { %v141_v27 = vmul.f32 %v398_v26, %v136_v25 }
 0x172   :  { %v145_v31 = vsel %vm144_vm2, %v141_v27, -inf }
 0x173   :  { %v138_v29 = vpop.permute.xlu0 %137 }
 0x174   :  { %v142_v30 = vmul.f32 %v400_v28, %v138_v29 }
 0x176   :  { %v146_v32 = vsel %vm144_vm2, %v142_v30, -inf }
 0x177   :  { %v147_v33 = vmax.f32 %v145_v31, %v146_v32 }
 0x179   :  { %v148_v34 = vrot.slane %v147_v33, 4 }
 0x17b   :  { %v149_v36 = vmax.f32 %v147_v33, %v148_v34 }
 0x17d   :  { %v150_v37 = vrot.slane %v149_v36, 2 }
 0x17f   :  { %v151_v39 = vmax.f32 %v149_v36, %v150_v37 }
 0x181   :  { %v152_v40 = vrot.slane %v151_v39, 1 }
 0x183   :  { %v153_v43 = vmax.f32 %v151_v39, %v152_v40 }
 0x185   :  { %v154_v44 = vmax.f32 %v143_v41, %v153_v43 }
 0x187   :  { %v155_v45 = vsub.f32 %v143_v41, %v154_v44  ;;  %v162_v46 = vrot.slane %v154_v44, %v161_v42  ;;  %304 = vst.msk [vmem:[#allocation2] sm:$0x1] %vm19_vm1, %v154_v44 }
 0x189   :  { %v156_v47 = vmul.f32 1.442695, %v155_v45  ;;  %v164_v48 = vsub.f32 %v141_v27, %v162_v46  ;;  %v165_v49 = vsub.f32 %v142_v30, %v162_v46 }
 0x18b   :  { %401 = vpow2.f32 %v156_v47  ;;  %v166_v50 = vmul.f32 1.442695, %v164_v48  ;;  %v168_v51 = vmul.f32 1.442695, %v165_v49 }
 0x18d   :  { %403 = vpow2.f32 %v166_v50 }
 0x18e   :  { %405 = vpow2.f32 %v168_v51 }
 0x195   :  { %v402_v52 = vpop.eup %401 }
 0x196   :  { %293 = vperm.xlu0 %387, %v402_v52   ;;  %v171_v1 = vmul.f32 %v402_v52, %v170_v63 }
 0x197   :  { %v404_v54 = vpop.eup %403 }
 0x198   :  { %v406_v55 = vpop.eup %405  ;;  %v172_v56 = vsel %vm144_vm2, %v404_v54, 0.0  ;;  %184 = vxpose.xlu1.b32.start [1/2] (short) (narrow) %v404_v54, 8 }
 0x199   :  { %v173_v57 = vsel %vm144_vm2, %v406_v55, 0.0 }
 0x19a   :  { %v174_v58 = vadd.f32 %v173_v57, %v172_v56 }
 0x19c   :  { %v175_v59 = vrot.slane %v174_v58, 4  ;;  %185 = vxpose.xlu1.b32.end [2/2] (short) (narrow) %v406_v55, 8 }
 0x19e   :  { %v176_v60 = vadd.f32 %v175_v59, %v174_v58 }
 0x1a0   :  { %v177_v61 = vrot.slane %v176_v60, 2 }
 0x1a2   :  { %v178_v62 = vadd.f32 %v177_v61, %v176_v60 }
 0x1a4   :  { %v179_v0 = vrot.slane %v178_v62, 1 }
 0x1a6   :  { %v180_v2 = vadd.f32 %v179_v0, %v178_v62 }
 0x1a8   :  { %v181_v3 = vadd.f32 %v180_v2, %v171_v1 }
 0x1aa   :  { %183 = vst.msk [vmem:[#allocation3] sm:$0x1] %vm19_vm1, %v181_v3 }
 0x1b1   :  { %v308_v4 = vld [vmem:[#allocation3] sm:$0x1] }
 0x1b2   :  { %407 = vrcp.f32 %v308_v4 }
 0x1ba   :  { %388 = vset.pattern.permute.xlu1 %v436_v23 }
 0x1bc   :  { %v408_v5 = vpop.eup %407 }
 0x1bd   :  { %313 = vperm.xlu1 %388, %v408_v5  }
 0x215   :  { %v294_v7 = vpop.permute.xlu0 %293 }
 0x216   :  { %v299_v8 = vrot.slane %v294_v7, %v161_v42 }
 0x218   :  { %v200_v6 = vpop.trf.xlu1  ;;  %v300_v10 = vmul.f32 %v299_v8, %v290_v9 }
 0x219   :  { %367 = vmatmul.mubr.msk.f32.vlgmr.msra.gmra.mrb[0].mxu1 %vm216_vm5, %v200_v6 }
 0x23c   :  { %v314_v14 = vpop.permute.xlu1 %313 }
 0x23d   :  { %v319_v15 = vrot.slane %v314_v14, %v161_v42 }
 0x2ec   :  { %v286_v11 = vpop.f32.mrb[0].mxu1 }
 0x2ed   :  { %v301_v12 = vadd.f32 %v300_v10, %v286_v11  ;;  %v368_v13 = vpop.f32.mrb[1].mxu1 }
 0x2ef   :  { %303 = vst.msk [vmem:[#allocation4] sm:$0x1] %vm22_vm3, %v301_v12 }
 0x2f6   :  { %v310_v16 = vld [vmem:[#allocation4] sm:$0x1] }
 0x2f7   :  { %v320_v17 = vmul.f32 %v319_v15, %v310_v16 }
 0x2f9   :  { %321 = vst.msk [vmem:[#allocation5] sm:$0x1] %vm22_vm3, %v320_v17 }
 0x2fa   :  { %420 = shalt.err (!%p417_p4)
}
 0x2fb   :  { %s421_s30 = scalar_lea.hbm %s517_s3, 16 }
 0x2fc   :  { %p422_p5 = scmp.ne.s32.totalorder %s517_s3, %s421_s30  ;;  %p425_p6 = scmp.lt.u32.totalorder %s421_s30, %s517_s3 }
 0x2fe   :  { %p427_p7 = pnand %p425_p6, %p422_p5 }
 0x300   :  { %430 = shalt.err (!%p427_p7)
}
 0x301   :  { %331 = dma.vmem_to_hbm [thread:$0]  %s329_s25, 16, %s517_s3, [#allocation6]  }
 0x302   :  { %431 = dma.done.wait [#allocation6], 16  }
 0x303   :  { %432 = vsyncadd [#allocation6], 4294967280 }
 0x304   :  { %335 = vsyncpa [#allocation6], 1 }

</bundles_post_ra>
